<compile_context>
chip_gen: v7x
topology: tpu7x:2x2x1
jax: 0.10.0
libtpu: 0.0.40
codegen_flags: <defaults>
</compile_context>

<pallas_src>
import functools

import jax
import jax.numpy as jnp
from jax.experimental import pallas as pl
from jax.experimental.pallas import tpu as pltpu


def _cdiv(a, b):
    return -(-a // b)


def _focal_loss_kernel(logits_ref, targets_ref, psum_ref, pcnt_ref, *,
                       alpha, gamma, ignore_index, n_rows, tile_rows,
                       blocks_per_group):
    cg = pl.program_id(0)      # core-group index ("parallel")
    j = pl.program_id(1)       # row-block index within the group ("arbitrary")

    @pl.when(j == 0)
    def _init():
        psum_ref[...] = jnp.zeros_like(psum_ref)
        pcnt_ref[...] = jnp.zeros_like(pcnt_ref)

    x = logits_ref[...].astype(jnp.float32)          # (T, C) upcast after DMA
    tgt = targets_ref[...]                           # (T, 1) int32
    t, nclass = x.shape

    # --- log-softmax pieces ------------------------------------------------
    m = jnp.max(x, axis=-1, keepdims=True)           # (T, 1)   XLU
    e = jnp.exp(x - m)                                # (T, C)   EUP
    sumexp = jnp.sum(e, axis=-1, keepdims=True)       # (T, 1)   XLU
    lse = m + jnp.log(sumexp)                         # (T, 1)

    # --- gather logit of the target class via a one-hot compare ------------
    classes = jax.lax.broadcasted_iota(jnp.int32, (t, nclass), 1)
    onehot = classes == tgt                           # (T, C)
    x_t = jnp.sum(jnp.where(onehot, x, 0.0), axis=-1, keepdims=True)  # (T,1)

    ignored = tgt == ignore_index
    # F.cross_entropy(reduction='none', ignore_index=...) gives 0 for ignored rows.
    ce = jnp.where(ignored, 0.0, lse - x_t)           # (T, 1)

    # pt = exp(-ce): one tiny (T,1) EUP exp (ignored rows: ce=0 -> pt=1 -> focal=0).
    pt = jnp.exp(-ce)
    omp = 1.0 - pt

    if gamma == 2.0:                                  # fast path: no log/exp
        pow_term = omp * omp
    elif gamma == 1.0:
        pow_term = omp
    elif gamma == 0.0:
        pow_term = jnp.ones_like(omp)
    else:                                             # safe pow for base >= 0
        pow_term = jnp.where(omp > 0.0,
                             jnp.exp(gamma * jnp.log(jnp.maximum(omp, 1e-38))),
                             0.0)
    focal = alpha * pow_term * ce                     # (T, 1)

    # --- mask padded / out-of-range rows + non-finite rows, accumulate -----
    row0 = (cg * blocks_per_group + j) * tile_rows    # unclamped global row base
    row_ids = row0 + jax.lax.broadcasted_iota(jnp.int32, (t, 1), 0)
    valid = (row_ids < n_rows) & jnp.isfinite(focal)  # (T, 1)

    fsum = jnp.sum(jnp.where(valid, focal, 0.0), axis=0, keepdims=True)  # (1,1)
    cnt = jnp.sum(valid.astype(jnp.float32), axis=0, keepdims=True)      # (1,1)
    psum_ref[...] += fsum.reshape(1, 1, 1)            # stays resident across j
    pcnt_ref[...] += cnt.reshape(1, 1, 1)


def _vmem_limit_bytes():
    """Generation-aware scoped-VMEM request (half of physical, capped at 64 MiB)."""
    cap = 0
    try:
        info = pltpu.get_tpu_info()
        cap = int(getattr(info, "vmem_capacity_bytes", 0) or 0)
    except Exception:
        cap = 0
    if cap <= 0:
        cap = 64 * 1024 * 1024          # conservative: v7x physical VMEM per TC
    return int(min(cap // 2, 64 * 1024 * 1024))


def _default_num_core_groups():
    """2 groups only where the chip has 2 TensorCores (v7x); else 1."""
    try:
        kind = jax.devices()[0].device_kind.lower()
    except Exception:
        return 1
    return 2 if ("v7" in kind or "7x" in kind) else 1


def focal_loss(logits, targets, *, alpha=1.0, gamma=2.0, reduction='mean',
               ignore_index=-100, tile_rows=None, num_core_groups=None):
    """logits: (N, C) float (f32/bf16/...); targets: (N,) int. Scalar output."""
    if reduction not in ('mean', 'sum'):
        raise NotImplementedError("only 'mean' and 'sum' reductions are supported")

    n, c = logits.shape
    targets2d = targets.astype(jnp.int32).reshape(n, 1)

    vmem_limit = _vmem_limit_bytes()

    # Tile sizing: byte budget, not a fixed row cap.  Per row we pay (per
    # pipeline buffer) the streamed logits bytes + ~512 B of lane padding for
    # the (T,1) targets column, double-buffered, plus ~3x C f32 in-kernel
    # intermediates (upcast x, e, the one-hot select temp).
    if tile_rows is None:
        stream_row = 2 * (c * logits.dtype.itemsize + 512)   # double-buffered
        temp_row = 3 * 4 * c                                  # f32 intermediates
        budget = int(vmem_limit * 0.75)
        tile_rows = budget // max(1, (stream_row + temp_row))
        tile_rows = int(max(8, min(8192, tile_rows)))
    tile_rows = int(tile_rows)
    if tile_rows >= n:
        tile_rows = n                              # one full block (always legal)
    else:
        tile_rows = max(8, (tile_rows // 8) * 8)   # sublane-aligned row tile

    nb = _cdiv(n, tile_rows)                       # number of row blocks
    if num_core_groups is None:
        num_core_groups = _default_num_core_groups()
    ncg = int(max(1, min(num_core_groups, nb)))    # core groups (v7x: 2 TCs)
    bpg = _cdiv(nb, ncg)                           # row blocks per core group

    def in_map(cg, j):
        # Clamp so trailing (empty) blocks of the last group never issue a
        # fully out-of-bounds DMA; their rows are masked in-kernel using the
        # *unclamped* row index.
        return (jnp.minimum(cg * bpg + j, nb - 1), 0)

    def out_map(cg, j):
        return (cg, 0, 0)

    kernel = functools.partial(
        _focal_loss_kernel, alpha=float(alpha), gamma=float(gamma),
        ignore_index=int(ignore_index), n_rows=n, tile_rows=tile_rows,
        blocks_per_group=bpg)

    psum, pcnt = pl.pallas_call(
        kernel,
        out_shape=(jax.ShapeDtypeStruct((ncg, 1, 1), jnp.float32),
                   jax.ShapeDtypeStruct((ncg, 1, 1), jnp.float32)),
        grid_spec=pltpu.PrefetchScalarGridSpec(
            num_scalar_prefetch=0,
            grid=(ncg, bpg),
            in_specs=[pl.BlockSpec((tile_rows, c), in_map),
                      pl.BlockSpec((tile_rows, 1), in_map)],
            out_specs=(pl.BlockSpec((1, 1, 1), out_map),
                       pl.BlockSpec((1, 1, 1), out_map)),
        ),
        compiler_params=pltpu.CompilerParams(
            dimension_semantics=("parallel", "arbitrary"),
            vmem_limit_bytes=vmem_limit),
    )(logits, targets2d)

    fsum = jnp.sum(psum)
    count = jnp.sum(pcnt)
    if reduction == 'mean':
        return jnp.where(count > 0.0, fsum / count, 0.0)
    return fsum


def _focal_loss_ref(logits, targets, *, alpha=1.0, gamma=2.0,
                    reduction='mean', ignore_index=-100):
    """Pure-JAX reference mirroring the PyTorch module."""
    x = logits.astype(jnp.float32)
    lse = jax.nn.logsumexp(x, axis=-1)
    x_t = jnp.take_along_axis(
        x, jnp.clip(targets, 0, x.shape[-1] - 1)[:, None], axis=-1)[:, 0]
    ce = lse - x_t
    ce = jnp.where(targets == ignore_index, 0.0, ce)
    pt = jnp.exp(-ce)
    focal = alpha * (1.0 - pt) ** gamma * ce
    valid = ~jnp.isnan(focal) & ~jnp.isinf(focal)
    fsum = jnp.sum(jnp.where(valid, focal, 0.0))
    count = jnp.sum(valid)
    if reduction == 'mean':
        return jnp.where(count > 0, fsum / count, 0.0)
    return fsum


if __name__ == "__main__":
    key = jax.random.PRNGKey(0)
    k1, k2 = jax.random.split(key)

    N, C = 300, 128          # small; 300 % 64 != 0 exercises the ragged last block
    logits = jax.random.normal(k1, (N, C), dtype=jnp.float32) * 2.0
    targets = jax.random.randint(k2, (N,), 0, C, dtype=jnp.int32)
    targets = targets.at[7].set(-100)       # exercise ignore_index
    targets = targets.at[123].set(-100)

    # Multi-block path: 2 core groups x 3 row blocks of 64 rows (last ragged,
    # plus one clamped/masked trailing block in group 1).
    out_mean = focal_loss(logits, targets, alpha=1.0, gamma=2.0,
                          reduction='mean', ignore_index=-100,
                          tile_rows=64, num_core_groups=2)
    out_mean = jax.block_until_ready(out_mean)
    ref_mean = _focal_loss_ref(logits, targets, alpha=1.0, gamma=2.0,
                               reduction='mean', ignore_index=-100)
    assert jnp.allclose(out_mean, ref_mean, rtol=1e-4, atol=1e-5), (out_mean, ref_mean)

    # Single-block auto-tiled path + 'sum' reduction + auto core groups.
    out_sum = focal_loss(logits, targets, alpha=1.0, gamma=2.0,
                         reduction='sum', ignore_index=-100)
    out_sum = jax.block_until_ready(out_sum)
    ref_sum = _focal_loss_ref(logits, targets, alpha=1.0, gamma=2.0,
                              reduction='sum', ignore_index=-100)
    assert jnp.allclose(out_sum, ref_sum, rtol=1e-4, atol=1e-3), (out_sum, ref_sum)

    # bf16 logits streamed without wrapper-side upcast (upcast happens in VMEM).
    logits_bf16 = logits.astype(jnp.bfloat16)
    out_bf16 = focal_loss(logits_bf16, targets, alpha=1.0, gamma=2.0,
                          reduction='mean', ignore_index=-100,
                          tile_rows=64, num_core_groups=2)
    out_bf16 = jax.block_until_ready(out_bf16)
    ref_bf16 = _focal_loss_ref(logits_bf16, targets, alpha=1.0, gamma=2.0,
                               reduction='mean', ignore_index=-100)
    assert jnp.allclose(out_bf16, ref_bf16, rtol=2e-3, atol=2e-3), (out_bf16, ref_bf16)

    print("KERNEL_OK")
</pallas_src>

<mosaic_0001>
module attributes {stable_mosaic.version = 11 : i64} {
  func.func @_focal_loss_kernel(%arg0: i32, %arg1: i32, %arg2: memref<64x128xf32, #tpu.memory_space<vmem>>, %arg3: memref<64x1xi32, #tpu.memory_space<vmem>>, %arg4: memref<1x1x1xf32, #tpu.memory_space<vmem>>, %arg5: memref<1x1x1xf32, #tpu.memory_space<vmem>>) attributes {dimension_semantics = [#tpu.dimension_semantics<parallel>, #tpu.dimension_semantics<arbitrary>], iteration_bounds = array<i64: 2, 3>, scalar_prefetch = 0 : i64, scratch_operands = 0 : i64, tpu.core_type = #tpu.core_type<tc>, window_params = [{transform_indices = @transform_0, window_bounds = array<i64: 64, 128>}, {transform_indices = @transform_1, window_bounds = array<i64: 64, 1>}, {transform_indices = @transform_2, window_bounds = array<i64: 1, 1, 1>}, {transform_indices = @transform_3, window_bounds = array<i64: 1, 1, 1>}]} {
    %c0_i32 = arith.constant 0 : i32
    %0 = arith.cmpi eq, %arg1, %c0_i32 : i32
    %1 = arith.extui %0 : i1 to i32
    %c0_i32_0 = arith.constant 0 : i32
    %2 = arith.cmpi ne, %1, %c0_i32_0 : i32
    scf.if %2 {
      %cst_27 = arith.constant 0.000000e+00 : f32
      %62 = vector.broadcast %cst_27 : f32 to vector<1x1x1xf32>
      %c0_28 = arith.constant 0 : index
      %c0_29 = arith.constant 0 : index
      %c0_30 = arith.constant 0 : index
      %63 = vector.load %arg4[%c0_28, %c0_29, %c0_30] : memref<1x1x1xf32, #tpu.memory_space<vmem>>, vector<1x1x1xf32>
      tpu.vector_store %arg4[%c0_28, %c0_29, %c0_30], %62 {strides = array<i32>} : memref<1x1x1xf32, #tpu.memory_space<vmem>>, vector<1x1x1xf32>,
      %cst_31 = arith.constant 0.000000e+00 : f32
      %64 = vector.broadcast %cst_31 : f32 to vector<1x1x1xf32>
      %c0_32 = arith.constant 0 : index
      %c0_33 = arith.constant 0 : index
      %c0_34 = arith.constant 0 : index
      %65 = vector.load %arg5[%c0_32, %c0_33, %c0_34] : memref<1x1x1xf32, #tpu.memory_space<vmem>>, vector<1x1x1xf32>
      tpu.vector_store %arg5[%c0_32, %c0_33, %c0_34], %64 {strides = array<i32>} : memref<1x1x1xf32, #tpu.memory_space<vmem>>, vector<1x1x1xf32>,
    } else {
    }
    %c0 = arith.constant 0 : index
    %c0_1 = arith.constant 0 : index
    %3 = vector.load %arg2[%c0, %c0_1] : memref<64x128xf32, #tpu.memory_space<vmem>>, vector<64x128xf32>
    %c0_2 = arith.constant 0 : index
    %c0_3 = arith.constant 0 : index
    %4 = vector.load %arg3[%c0_2, %c0_3] : memref<64x1xi32, #tpu.memory_space<vmem>>, vector<64x1xi32>
    %cst = arith.constant dense<0xFF800000> : vector<64xf32>
    %5 = vector.multi_reduction <maximumf>, %3, %cst [1] : vector<64x128xf32> to vector<64xf32>
    %6 = vector.shape_cast %5 : vector<64xf32> to vector<64x1xf32>
    %7 = vector.broadcast %6 : vector<64x1xf32> to vector<64x128xf32>
    %8 = arith.subf %3, %7 : vector<64x128xf32>
    %9 = math.exp %8 : vector<64x128xf32>
    %cst_4 = arith.constant dense<0.000000e+00> : vector<64xf32>
    %10 = vector.multi_reduction <add>, %9, %cst_4 [1] : vector<64x128xf32> to vector<64xf32>
    %11 = vector.shape_cast %10 : vector<64xf32> to vector<64x1xf32>
    %12 = math.log %11 : vector<64x1xf32>
    %13 = arith.addf %6, %12 : vector<64x1xf32>
    %14 = tpu.iota {dimensions = array<i32: 1>} : vector<64x128xi32>
    %15 = vector.broadcast %4 : vector<64x1xi32> to vector<64x128xi32>
    %16 = arith.cmpi eq, %14, %15 : vector<64x128xi32>
    %cst_5 = arith.constant 0.000000e+00 : f32
    %17 = vector.broadcast %cst_5 : f32 to vector<64x128xf32>
    %18 = arith.select %16, %3, %17 : vector<64x128xi1>, vector<64x128xf32>
    %cst_6 = arith.constant dense<0.000000e+00> : vector<64xf32>
    %19 = vector.multi_reduction <add>, %18, %cst_6 [1] : vector<64x128xf32> to vector<64xf32>
    %20 = vector.shape_cast %19 : vector<64xf32> to vector<64x1xf32>
    %c-100_i32 = arith.constant -100 : i32
    %21 = vector.broadcast %c-100_i32 : i32 to vector<64x1xi32>
    %22 = arith.cmpi eq, %4, %21 : vector<64x1xi32>
    %23 = arith.subf %13, %20 : vector<64x1xf32>
    %cst_7 = arith.constant 0.000000e+00 : f32
    %24 = vector.broadcast %cst_7 : f32 to vector<64x1xf32>
    %25 = arith.select %22, %24, %23 : vector<64x1xi1>, vector<64x1xf32>
    %cst_8 = arith.constant 0.000000e+00 : f32
    %26 = vector.broadcast %cst_8 : f32 to vector<64x1xf32>
    %27 = arith.subf %26, %25 : vector<64x1xf32>
    %28 = math.exp %27 : vector<64x1xf32>
    %cst_9 = arith.constant 1.000000e+00 : f32
    %29 = vector.broadcast %cst_9 : f32 to vector<64x1xf32>
    %30 = arith.subf %29, %28 : vector<64x1xf32>
    %31 = arith.mulf %30, %30 : vector<64x1xf32>
    %cst_10 = arith.constant 1.000000e+00 : f32
    %32 = vector.broadcast %cst_10 : f32 to vector<64x1xf32>
    %33 = arith.mulf %32, %31 : vector<64x1xf32>
    %34 = arith.mulf %33, %25 : vector<64x1xf32>
    %c3_i32 = arith.constant 3 : i32
    %35 = arith.muli %arg0, %c3_i32 : i32
    %36 = arith.addi %35, %arg1 : i32
    %c64_i32 = arith.constant 64 : i32
    %37 = arith.muli %36, %c64_i32 : i32
    %38 = tpu.iota {dimensions = array<i32: 0>} : vector<64x1xi32>
    %39 = vector.broadcast %37 : i32 to vector<64x1xi32>
    %40 = arith.addi %39, %38 : vector<64x1xi32>
    %c300_i32 = arith.constant 300 : i32
    %41 = vector.broadcast %c300_i32 : i32 to vector<64x1xi32>
    %42 = arith.cmpi slt, %40, %41 : vector<64x1xi32>
    %43 = tpu.weird %34 : vector<64x1xf32> -> vector<64x1xi1>
    %cst_11 = arith.constant dense<true> : vector<64x1xi1>
    %44 = arith.xori %43, %cst_11 : vector<64x1xi1>
    %45 = arith.andi %42, %44 : vector<64x1xi1>
    %cst_12 = arith.constant 0.000000e+00 : f32
    %46 = vector.broadcast %cst_12 : f32 to vector<64x1xf32>
    %47 = arith.select %45, %34, %46 : vector<64x1xi1>, vector<64x1xf32>
    %cst_13 = arith.constant dense<0.000000e+00> : vector<1xf32>
    %48 = vector.multi_reduction <add>, %47, %cst_13 [0] : vector<64x1xf32> to vector<1xf32>
    %49 = vector.shape_cast %48 : vector<1xf32> to vector<1x1xf32>
    %50 = arith.extui %45 : vector<64x1xi1> to vector<64x1xi32>
    %51 = arith.sitofp %50 : vector<64x1xi32> to vector<64x1xf32>
    %cst_14 = arith.constant dense<0.000000e+00> : vector<1xf32>
    %52 = vector.multi_reduction <add>, %51, %cst_14 [0] : vector<64x1xf32> to vector<1xf32>
    %53 = vector.shape_cast %52 : vector<1xf32> to vector<1x1xf32>
    %c0_15 = arith.constant 0 : index
    %c0_16 = arith.constant 0 : index
    %c0_17 = arith.constant 0 : index
    %54 = vector.load %arg4[%c0_15, %c0_16, %c0_17] : memref<1x1x1xf32, #tpu.memory_space<vmem>>, vector<1x1x1xf32>
    %55 = vector.shape_cast %49 : vector<1x1xf32> to vector<1x1x1xf32>
    %56 = arith.addf %54, %55 : vector<1x1x1xf32>
    %c0_18 = arith.constant 0 : index
    %c0_19 = arith.constant 0 : index
    %c0_20 = arith.constant 0 : index
    %57 = vector.load %arg4[%c0_18, %c0_19, %c0_20] : memref<1x1x1xf32, #tpu.memory_space<vmem>>, vector<1x1x1xf32>
    tpu.vector_store %arg4[%c0_18, %c0_19, %c0_20], %56 {strides = array<i32>} : memref<1x1x1xf32, #tpu.memory_space<vmem>>, vector<1x1x1xf32>,
    %c0_21 = arith.constant 0 : index
    %c0_22 = arith.constant 0 : index
    %c0_23 = arith.constant 0 : index
    %58 = vector.load %arg5[%c0_21, %c0_22, %c0_23] : memref<1x1x1xf32, #tpu.memory_space<vmem>>, vector<1x1x1xf32>
    %59 = vector.shape_cast %53 : vector<1x1xf32> to vector<1x1x1xf32>
    %60 = arith.addf %58, %59 : vector<1x1x1xf32>
    %c0_24 = arith.constant 0 : index
    %c0_25 = arith.constant 0 : index
    %c0_26 = arith.constant 0 : index
    %61 = vector.load %arg5[%c0_24, %c0_25, %c0_26] : memref<1x1x1xf32, #tpu.memory_space<vmem>>, vector<1x1x1xf32>
    tpu.vector_store %arg5[%c0_24, %c0_25, %c0_26], %60 {strides = array<i32>} : memref<1x1x1xf32, #tpu.memory_space<vmem>>, vector<1x1x1xf32>,
    return
  }
  func.func @transform_0(%arg0: i32, %arg1: i32) -> (i32, i32) {
    %c3_i32 = arith.constant 3 : i32
    %0 = arith.muli %arg0, %c3_i32 : i32
    %1 = arith.addi %0, %arg1 : i32
    %c4_i32 = arith.constant 4 : i32
    %2 = arith.minsi %1, %c4_i32 : i32
    %c0_i32 = arith.constant 0 : i32
    %c0_i32_0 = arith.constant 0 : i32
    return %2, %c0_i32 : i32, i32
  }
  func.func @transform_1(%arg0: i32, %arg1: i32) -> (i32, i32) {
    %c3_i32 = arith.constant 3 : i32
    %0 = arith.muli %arg0, %c3_i32 : i32
    %1 = arith.addi %0, %arg1 : i32
    %c4_i32 = arith.constant 4 : i32
    %2 = arith.minsi %1, %c4_i32 : i32
    %c0_i32 = arith.constant 0 : i32
    %c0_i32_0 = arith.constant 0 : i32
    return %2, %c0_i32 : i32, i32
  }
  func.func @transform_2(%arg0: i32, %arg1: i32) -> (i32, i32, i32) {
    %c0_i32 = arith.constant 0 : i32
    %c0_i32_0 = arith.constant 0 : i32
    %c0_i32_1 = arith.constant 0 : i32
    return %arg0, %c0_i32, %c0_i32_0 : i32, i32, i32
  }
  func.func @transform_3(%arg0: i32, %arg1: i32) -> (i32, i32, i32) {
    %c0_i32 = arith.constant 0 : i32
    %c0_i32_0 = arith.constant 0 : i32
    %c0_i32_1 = arith.constant 0 : i32
    return %arg0, %c0_i32, %c0_i32_0 : i32, i32, i32
  }
}

</mosaic_0001>

<bundles_post_ra>
// kernel: tpu_custom_call.1
= control target key start
LH: loop header
LB: loop body
LE: loop exit
PB: predicated region body
PF: predicated region fallthrough
CT: control target
= control target key end

     0   :  { %s942_s12 = smov 0   ;;  %s944_s13 = smov 0   ;;  %s1276_s0 = inlined_call_operand.vmem [shape: f32[300,128], index: 0, kind: input, shape index: {}]   ;;  %s1277_s1 = inlined_call_operand.vmem [shape: s32[300,1], index: 1, kind: input, shape index: {}]   ;;  %s1278_s2 = inlined_call_operand.vmem [shape: f32[2,1,1], index: 2, kind: output, shape index: {0}]   ;;  %s1279_s3 = inlined_call_operand.vmem [shape: f32[2,1,1], index: 3, kind: output, shape index: {1}]  }
   0x1   :  { %s946_s14 = smov 0   ;;  %s948_s15 = smov 0  }
   0x2   :  { %s950_s16 = smov 0  }
   0x3 LB: > { %s23_s17 = sadd.s32 1, %s908_s14  ;;  %s26_s18 = sadd.s32 1, %s912_s15  ;;  %s916_s16 = sphi %s950_s16, %s14_s16   ;;  %s912_s15 = sphi %s948_s15, %s1291_s15   ;;  %s908_s14 = sphi %s946_s14, %s1290_s14   ;;  %s904_s13 = sphi %s944_s13, %s1289_s13   ;;  %s900_s12 = sphi %s942_s12, %s1288_s12  }
   0x4   : > { %p24_p0 = scmp.ge.s32.totalorder %s23_s17, 3  ;;  %p767_p1 = scmp.ge.s32.totalorder %s916_s16, 1 }
   0x5   : > { %p212_p2 = scmp.lt.s32.totalorder %s916_s16, 7 }
   0x6   : > { %s1293_s17 = smov (%p24_p0, %s23_s17), 0  ;;  %s1295_s18 = smov (!%p24_p0, %s26_s18), %s912_s15 }
   0x7   : > { %p213_p3 = pnand %p767_p1, %p212_p2  ;;  %p28_p4 = scmp.ge.s32.totalorder %s1295_s18, 2 }
   0x8   : > { %s258_s19 = smul.u32 (!%p213_p3), 3, %s904_s13  ;;  %p302_p5 = scmp.lt.s32.totalorder (!%p213_p3), %s904_s13, 1 }
   0x9   : > { %s1297_s18 = smov (%p28_p4, %s1295_s18), 0  ;;  %216 = sbr.rel (%p213_p3) target bundleno = 410 (0x19a), region = 28 }
   0xa   : > { %s975_s20 = sadd.s32 (!%p213_p3), %s900_s12, %s258_s19  ;;  %p772_p8 = scmp.ne.s32.totalorder (!%p213_p3), %s900_s12, 0 }
   0xb   : > { %p260_p6 = scmp.lt.s32.totalorder (!%p213_p3), %s975_s20, 4 }
  0x10   : > { %s1299_s13 = smov (!%p302_p5, %s904_s13), 1  ;;  %vm312_vm0 = vcmask (!%p772_p8), 0   ;;  %v918_v0 = vmov (!%p772_p8), 0.0  }
  0x11   : > { %s261_s21 = scalar_select %p260_p6, %s975_s20, 4 }
  0x12   : > { %s982_s24 = scalar_lea.vmem %s1278_s2, %s1299_s13  ;;  %s987_s27 = scalar_lea.vmem %s1279_s3, %s1299_s13 }
  0x13   : > { %s768_s28 = sshll.u32 %s261_s21, 3  ;;  %311 = sbr.rel (%p772_p8) target bundleno = 26 (0x1a), region = 32  ;;  %313 = vst.msk [vmem:[%s982_s24] sm:$0x1] (!%p772_p8), %vm312_vm0, %v918_v0  ;;  %314 = vst.msk [vmem:[%s987_s27] sm:$0x1] (!%p772_p8), %vm312_vm0, %v918_v0 }
  0x14   : > { %p267_p7 = scmp.lt.s32.totalorder %s768_s28, 37 }
  0x16   : > { %s1301_s28 = smov (!%p267_p7, %s768_s28), 37 }
  0x17   : > { %s769_s29 = sshll.u32 %s1301_s28, 3 }
  0x18   : > { %s270_s5 = scalar_lea.vmem %s1276_s0, %s769_s29  ;;  %s995_s8 = scalar_lea.vmem %s1277_s1, %s769_s29 }
  0x1a PF: > { %v1000_v1 = vld [vmem:[%s270_s5 + $0x10] sm:$0xff]  ;;  %v1002_v2 = vld [vmem:[%s270_s5] sm:$0xff]  ;;  %v1006_v3 = vld [vmem:[%s270_s5 + $0x18] sm:$0xff]  ;;  %v919_v5 = vmov 0   ;;  %v411_v47 = vlaneseq  ;;  %s773_s9 = sshll.u32 %s975_s20, 6 }
  0x1b   : > { %335 = vmax.xlane.f32.xlu1 %v1000_v1  ;;  %331 = vmax.xlane.f32.xlu0 %v1002_v2  ;;  %v1008_v4 = vld [vmem:[%s270_s5 + $0x8] sm:$0xff]  ;;  %v1014_v7 = vld [vmem:[%s270_s5 + $0x20] sm:$0xff]  ;;  %v1018_v8 = vld [vmem:[%s270_s5 + $0x38] sm:$0xff] }
  0x1c   : > { %829 = vset.pattern.permute.xlu1 %v919_v5  ;;  %828 = vset.pattern.permute.xlu0 %v919_v5  ;;  %v1012_v6 = vld [vmem:[%s270_s5 + $0x28] sm:$0xff]  ;;  %v1020_v9 = vld [vmem:[%s270_s5 + $0x30] sm:$0xff]  ;;  %v1032_v12 = vld [vmem:[%s995_s8] sm:$0xff]  ;;  %v412_v51 = vand.u32 127, %v411_v47 }
  0x1d   : > { %v1025_v10 = vld [vmem:[%s995_s8 + $0x8] sm:$0xff]  ;;  %v1029_v11 = vld [vmem:[%s995_s8 + $0x10] sm:$0xff]  ;;  %v1036_v13 = vld [vmem:[%s995_s8 + $0x18] sm:$0xff]  ;;  %vm469_vm11 = vcmp.eq.s32.totalorder %v1032_v12, 4294967196 }
  0x1e   : > { %v1041_v14 = vld [vmem:[%s995_s8 + $0x20] sm:$0xff]  ;;  %v1045_v15 = vld [vmem:[%s995_s8 + $0x28] sm:$0xff]  ;;  %v1049_v16 = vld [vmem:[%s995_s8 + $0x30] sm:$0xff]  ;;  %vm470_vm9 = vcmp.eq.s32.totalorder %v1025_v10, 4294967196  ;;  %vm472_vm10 = vcmp.eq.s32.totalorder %v1036_v13, 4294967196  ;;  %vm471_vm12 = vcmp.eq.s32.totalorder %v1029_v11, 4294967196 }
  0x1f   : > { %337 = vmax.xlane.f32.xlu1 %v1006_v3  ;;  %333 = vmax.xlane.f32.xlu0 %v1008_v4  ;;  %v1053_v17 = vld [vmem:[%s995_s8 + $0x38] sm:$0xff]  ;;  %vm474_vm13 = vcmp.eq.s32.totalorder %v1045_v15, 4294967196  ;;  %vm473_vm14 = vcmp.eq.s32.totalorder %v1041_v14, 4294967196  ;;  %vm475_vm0 = vcmp.eq.s32.totalorder %v1049_v16, 4294967196 }
  0x20   : > { %vm476_vm15 = vcmp.eq.s32.totalorder %v1053_v17, 4294967196 }
  0x23   : > { %341 = vmax.xlane.f32.xlu1 %v1012_v6  ;;  %339 = vmax.xlane.f32.xlu0 %v1014_v7 }
  0x27   : > { %345 = vmax.xlane.f32.xlu1 %v1018_v8  ;;  %343 = vmax.xlane.f32.xlu0 %v1020_v9 }
  0x38   : > { %417 = vperm.xlu1 %829, %v1025_v10  }
  0x3c   : > { %420 = vperm.xlu1 %829, %v1029_v11  }
  0x3d   : > { %414 = vperm.xlu0 %828, %v1032_v12  }
  0x40   : > { %423 = vperm.xlu1 %829, %v1036_v13  }
  0x44   : > { %426 = vperm.xlu1 %829, %v1041_v14  }
  0x48   : > { %429 = vperm.xlu1 %829, %v1045_v15  }
  0x4c   : > { %432 = vperm.xlu1 %829, %v1049_v16  }
  0x50   : > { %435 = vperm.xlu1 %829, %v1053_v17  }
  0xa8   : > { %v1056_v18 = vpop.xlane.xlu1 %335  ;;  %v1058_v19 = vpop.xlane.xlu0 %331 }
  0xa9   : > { %v347_v20 = vsub.f32 %v1002_v2, %v1058_v19  ;;  %v349_v26 = vsub.f32 %v1000_v1, %v1056_v18 }
  0xab   : > { %v355_v21 = vmul.f32 1.442695, %v347_v20  ;;  %v359_v33 = vmul.f32 1.442695, %v349_v26 }
  0xac   : > { %v1062_v22 = vpop.xlane.xlu1 %337  ;;  %v1064_v23 = vpop.xlane.xlu0 %333 }
  0xad   : > { %v350_v24 = vsub.f32 %v1006_v3, %v1062_v22  ;;  %v348_v25 = vsub.f32 %v1008_v4, %v1064_v23  ;;  %830 = vpow2.f32 %v355_v21 }
  0xaf   : > { %v361_v27 = vmul.f32 1.442695, %v350_v24  ;;  %v357_v28 = vmul.f32 1.442695, %v348_v25 }
  0xb0   : > { %v1072_v29 = vpop.xlane.xlu1 %341  ;;  %v1074_v30 = vpop.xlane.xlu0 %339 }
  0xb1   : > { %832 = vpow2.f32 %v361_v27  ;;  %v352_v31 = vsub.f32 %v1012_v6, %v1072_v29  ;;  %v351_v32 = vsub.f32 %v1014_v7, %v1074_v30 }
  0xb2   : > { %834 = vpow2.f32 %v357_v28 }
  0xb3   : > { %v365_v34 = vmul.f32 1.442695, %v352_v31  ;;  %v363_v36 = vmul.f32 1.442695, %v351_v32 }
  0xb4   : > { %v1080_v35 = vpop.xlane.xlu1 %345  ;;  %v1082_v37 = vpop.xlane.xlu0 %343 }
  0xb5   : > { %836 = vpow2.f32 %v365_v34  ;;  %v354_v38 = vsub.f32 %v1018_v8, %v1080_v35  ;;  %v353_v39 = vsub.f32 %v1020_v9, %v1082_v37 }
  0xb6   : > { %838 = vpow2.f32 %v359_v33 }
  0xb7   : > { %v369_v40 = vmul.f32 1.442695, %v354_v38  ;;  %v831_v41 = vpop.eup %830  ;;  %840 = vpow2.f32 %v363_v36  ;;  %v367_v43 = vmul.f32 1.442695, %v353_v39 }
  0xb8   : > { %v418_v42 = vpop.permute.xlu1 %417  ;;  %371 = vadd.xlane.f32.xlu1 %v831_v41 }
  0xb9   : > { %842 = vpow2.f32 %v369_v40  ;;  %vm438_vm1 = vcmp.eq.s32.totalorder %v412_v51, %v418_v42 }
  0xba   : > { %844 = vpow2.f32 %v367_v43  ;;  %v446_v58 = vsel %vm438_vm1, %v1008_v4, 0.0  ;;  %vm602_vm1 = vcmask 7168  }
  0xbb   : > { %v833_v44 = vpop.eup %832 }
  0xbc   : > { %v835_v45 = vpop.eup %834  ;;  %v421_v46 = vpop.permute.xlu1 %420  ;;  %377 = vadd.xlane.f32.xlu1 %v833_v44 }
  0xbd   : > { %373 = vadd.xlane.f32.xlu0 %v835_v45  ;;  %v415_v55 = vpop.permute.xlu0 %414  ;;  %vm439_vm4 = vcmp.eq.s32.totalorder %v412_v51, %v421_v46 }
  0xbe   : > { %vm437_vm2 = vcmp.eq.s32.totalorder %v412_v51, %v415_v55  ;;  %v447_v0 = vsel %vm439_vm4, %v1000_v1, 0.0 }
  0xbf   : > { %v837_v48 = vpop.eup %836  ;;  %v445_v59 = vsel %vm437_vm2, %v1002_v2, 0.0 }
  0xc0   : > { %v839_v49 = vpop.eup %838  ;;  %v424_v50 = vpop.permute.xlu1 %423  ;;  %381 = vadd.xlane.f32.xlu1 %v837_v48 }
  0xc1   : > { %375 = vadd.xlane.f32.xlu0 %v839_v49  ;;  %v841_v52 = vpop.eup %840  ;;  %vm440_vm3 = vcmp.eq.s32.totalorder %v412_v51, %v424_v50 }
  0xc2   : > { %v448_v61 = vsel %vm440_vm3, %v1006_v3, 0.0 }
  0xc3   : > { %v843_v53 = vpop.eup %842 }
  0xc4   : > { %v427_v54 = vpop.permute.xlu1 %426  ;;  %385 = vadd.xlane.f32.xlu1 %v843_v53  ;;  %v845_v56 = vpop.eup %844 }
  0xc5   : > { %379 = vadd.xlane.f32.xlu0 %v841_v52  ;;  %vm441_vm6 = vcmp.eq.s32.totalorder %v412_v51, %v427_v54 }
  0xc6   : > { %v449_v2 = vsel %vm441_vm6, %v1014_v7, 0.0 }
  0xc8   : > { %v430_v57 = vpop.permute.xlu1 %429  ;;  %455 = vadd.xlane.f32.xlu1 %v446_v58 }
  0xc9   : > { %383 = vadd.xlane.f32.xlu0 %v845_v56  ;;  %vm442_vm5 = vcmp.eq.s32.totalorder %v412_v51, %v430_v57 }
  0xca   : > { %v450_v63 = vsel %vm442_vm5, %v1012_v6, 0.0  ;;  %vm920_vm5 = vmmov 1  }
  0xcc   : > { %v433_v60 = vpop.permute.xlu1 %432  ;;  %459 = vadd.xlane.f32.xlu1 %v448_v61 }
  0xcd   : > { %453 = vadd.xlane.f32.xlu0 %v445_v59  ;;  %vm443_vm8 = vcmp.eq.s32.totalorder %v412_v51, %v433_v60 }
  0xce   : > { %v451_v3 = vsel %vm443_vm8, %v1020_v9, 0.0 }
  0xd0   : > { %v436_v62 = vpop.permute.xlu1 %435  ;;  %463 = vadd.xlane.f32.xlu1 %v450_v63 }
  0xd1   : > { %vm444_vm7 = vcmp.eq.s32.totalorder %v412_v51, %v436_v62  ;;  %457 = vadd.xlane.f32.xlu0 %v447_v0 }
  0xd2   : > { %v452_v4 = vsel %vm444_vm7, %v1018_v8, 0.0 }
  0xd4   : > { %467 = vadd.xlane.f32.xlu1 %v452_v4 }
  0xd5   : > { %461 = vadd.xlane.f32.xlu0 %v449_v2 }
  0xd9   : > { %465 = vadd.xlane.f32.xlu0 %v451_v3 }
 0x145   : > { %v372_v5 = vpop.xlane.xlu1 %371 }
 0x146   : > { %846 = vlog2.f32 %v372_v5  ;;  %v1131_v5 = vshrl.u32 %v411_v47, 7 }
 0x149   : > { %v378_v20 = vpop.xlane.xlu1 %377 }
 0x14a   : > { %v374_v6 = vpop.xlane.xlu0 %373  ;;  %848 = vlog2.f32 %v378_v20 }
 0x14b   : > { %850 = vlog2.f32 %v374_v6 }
 0x14d   : > { %v382_v1 = vpop.xlane.xlu1 %381 }
 0x14e   : > { %v376_v21 = vpop.xlane.xlu0 %375  ;;  %852 = vlog2.f32 %v382_v1 }
 0x14f   : > { %854 = vlog2.f32 %v376_v21 }
 0x150   : > { %v847_v24 = vpop.eup %846 }
 0x151   : > { %v386_v8 = vpop.xlane.xlu1 %385  ;;  %v388_v26 = vmul.f32 0.6931472, %v847_v24 }
 0x152   : > { %v380_v25 = vpop.xlane.xlu0 %379  ;;  %856 = vlog2.f32 %v386_v8 }
 0x153   : > { %858 = vlog2.f32 %v380_v25  ;;  %v403_v38 = vadd.f32 %v388_v26, %v1058_v19  ;;  %v1147_v26 = vstv %s773_s9 }
 0x154   : > { %v849_v7 = vpop.eup %848 }
 0x155   : > { %v851_v27 = vpop.eup %850  ;;  %v394_v9 = vmul.f32 0.6931472, %v849_v7  ;;  %v456_v28 = vpop.xlane.xlu1 %455 }
 0x156   : > { %v384_v31 = vpop.xlane.xlu0 %383  ;;  %v390_v32 = vmul.f32 0.6931472, %v851_v27  ;;  %v548_v27 = vadd.s32 24, %v1131_v5 }
 0x157   : > { %860 = vlog2.f32 %v384_v31  ;;  %v406_v33 = vadd.f32 %v394_v9, %v1062_v22  ;;  %v550_v31 = vadd.s32 40, %v1131_v5 }
 0x158   : > { %v853_v34 = vpop.eup %852  ;;  %v404_v36 = vadd.f32 %v390_v32, %v1064_v23 }
 0x159   : > { %v855_v39 = vpop.eup %854  ;;  %v398_v40 = vmul.f32 0.6931472, %v853_v34  ;;  %v460_v41 = vpop.xlane.xlu1 %459 }
 0x15a   : > { %v454_v42 = vpop.xlane.xlu0 %453  ;;  %v392_v43 = vmul.f32 0.6931472, %v855_v39  ;;  %v478_v44 = vsub.f32 %v404_v36, %v456_v28  ;;  %v480_v45 = vsub.f32 %v406_v33, %v460_v41 }
 0x15b   : > { %v477_v46 = vsub.f32 %v403_v38, %v454_v42  ;;  %v408_v19 = vadd.f32 %v398_v40, %v1072_v29  ;;  %v557_v38 = vadd.s32 %v1147_v26, %v548_v27  ;;  %v547_v40 = vadd.s32 16, %v1131_v5 }
 0x15c   : > { %v857_v22 = vpop.eup %856  ;;  %v1106_v23 = vsel %vm470_vm9, 0.0, %v478_v44  ;;  %v1108_v10 = vsel %vm472_vm10, 0.0, %v480_v45  ;;  %v405_v12 = vadd.f32 %v392_v43, %v1056_v18  ;;  %v554_v45 = vadd.s32 %v1147_v26, %v1131_v5 }
 0x15d   : > { %v1110_v13 = vsel %vm469_vm11, 0.0, %v477_v46  ;;  %v859_v48 = vpop.eup %858  ;;  %v402_v49 = vmul.f32 0.6931472, %v857_v22  ;;  %v494_v50 = vsub.f32 0.0, %v1106_v23  ;;  %v496_v51 = vsub.f32 0.0, %v1108_v10  ;;  %v464_v53 = vpop.xlane.xlu1 %463 }
 0x15e   : > { %v493_v52 = vsub.f32 0.0, %v1110_v13  ;;  %v458_v54 = vpop.xlane.xlu0 %457  ;;  %v396_v29 = vmul.f32 0.6931472, %v859_v48  ;;  %v482_v55 = vsub.f32 %v408_v19, %v464_v53  ;;  %v559_v46 = vadd.s32 %v1147_v26, %v550_v31 }
 0x15f   : > { %v479_v56 = vsub.f32 %v405_v12, %v458_v54  ;;  %v503_v57 = vmul.f32 1.442695, %v494_v50  ;;  %v507_v58 = vmul.f32 1.442695, %v496_v51  ;;  %v410_v18 = vadd.f32 %v402_v49, %v1080_v35 }
 0x160   : > { %v501_v59 = vmul.f32 1.442695, %v493_v52  ;;  %v1121_v61 = vsel %vm474_vm13, 0.0, %v482_v55  ;;  %v407_v63 = vadd.f32 %v396_v29, %v1074_v30  ;;  %v552_v49 = vadd.s32 56, %v1131_v5 }
 0x161   : > { %v861_v60 = vpop.eup %860  ;;  %v1125_v62 = vsel %vm471_vm12, 0.0, %v479_v56  ;;  %862 = vpow2.f32 %v503_v57  ;;  %v498_v4 = vsub.f32 0.0, %v1121_v61  ;;  %v468_v2 = vpop.xlane.xlu1 %467  ;;  %vm565_vm3 = vcmp.lt.s32.totalorder %v557_v38, 300 }
 0x162   : > { %v400_v0 = vmul.f32 0.6931472, %v861_v60  ;;  %v495_v35 = vsub.f32 0.0, %v1125_v62  ;;  %v462_v3 = vpop.xlane.xlu0 %461  ;;  %864 = vpow2.f32 %v507_v58  ;;  %v484_v15 = vsub.f32 %v410_v18, %v468_v2 }
 0x163   : > { %v481_v20 = vsub.f32 %v407_v63, %v462_v3  ;;  %866 = vpow2.f32 %v501_v59  ;;  %v511_v11 = vmul.f32 1.442695, %v498_v4  ;;  %v556_v51 = vadd.s32 %v1147_v26, %v547_v40 }
 0x164   : > { %v505_v6 = vmul.f32 1.442695, %v495_v35  ;;  %v409_v30 = vadd.f32 %v400_v0, %v1082_v37  ;;  %v1136_v1 = vsel %vm476_vm15, 0.0, %v484_v15  ;;  %v546_v37 = vadd.s32 8, %v1131_v5 }
 0x165   : > { %v1140_v21 = vsel %vm473_vm14, 0.0, %v481_v20  ;;  %868 = vpow2.f32 %v511_v11  ;;  %v500_v47 = vsub.f32 0.0, %v1136_v1  ;;  %v549_v29 = vadd.s32 32, %v1131_v5 }
 0x166   : > { %v497_v24 = vsub.f32 0.0, %v1140_v21  ;;  %v466_v8 = vpop.xlane.xlu0 %465  ;;  %870 = vpow2.f32 %v505_v6  ;;  %v555_v28 = vadd.s32 %v1147_v26, %v546_v37  ;;  %vm562_vm8 = vcmp.lt.s32.totalorder %v554_v45, 300 }
 0x167   : > { %v483_v25 = vsub.f32 %v409_v30, %v466_v8  ;;  %v515_v17 = vmul.f32 1.442695, %v500_v47  ;;  %vm567_vm9 = vcmp.lt.s32.totalorder %v559_v46, 300  ;;  %v561_v57 = vadd.s32 %v1147_v26, %v552_v49 }
 0x168   : > { %v509_v7 = vmul.f32 1.442695, %v497_v24  ;;  %vm563_vm2 = vcmp.lt.s32.totalorder %v555_v28, 300  ;;  %v921_v18 = vmov 0.0   ;;  %vm564_vm15 = vcmp.lt.s32.totalorder %v556_v51, 300 }
 0x169   : > { %v1149_v14 = vsel %vm475_vm0, 0.0, %v483_v25  ;;  %872 = vpow2.f32 %v515_v17  ;;  %v558_v35 = vadd.s32 %v1147_v26, %v549_v29  ;;  %v551_v20 = vadd.s32 48, %v1131_v5 }
 0x16a   : > { %v499_v16 = vsub.f32 0.0, %v1149_v14  ;;  %874 = vpow2.f32 %v509_v7 }
 0x16b   : > { %v863_v9 = vpop.eup %862 }
 0x16c   : > { %v513_v32 = vmul.f32 1.442695, %v499_v16  ;;  %v865_v33 = vpop.eup %864  ;;  %v518_v34 = vsub.f32 1.0, %v863_v9 }
 0x16d   : > { %v867_v36 = vpop.eup %866  ;;  %v520_v39 = vsub.f32 1.0, %v865_v33 }
 0x16e   : > { %876 = vpow2.f32 %v513_v32  ;;  %v526_v41 = vmul.f32 %v518_v34, %v518_v34  ;;  %v517_v42 = vsub.f32 1.0, %v867_v36 }
 0x16f   : > { %v869_v43 = vpop.eup %868  ;;  %v528_v44 = vmul.f32 %v520_v39, %v520_v39 }
 0x170   : > { %v871_v19 = vpop.eup %870  ;;  %v534_v22 = vmul.f32 %v526_v41, %v1106_v23  ;;  %v525_v12 = vmul.f32 %v517_v42, %v517_v42  ;;  %v522_v48 = vsub.f32 1.0, %v869_v43 }
 0x171   : > { %v1163_v50 = vmul.f32 %v528_v44, %v1108_v10  ;;  %v519_v52 = vsub.f32 1.0, %v871_v19 }
 0x172   : > { %vm571_vm4 = vweird.f32 %v534_v22  ;;  %v533_v53 = vmul.f32 %v525_v12, %v1110_v13  ;;  %v530_v54 = vmul.f32 %v522_v48, %v522_v48 }
 0x173   : > { %v873_v55 = vpop.eup %872  ;;  %vm579_vm6 = vmxor %vm571_vm4, %vm920_vm5  ;;  %vm573_vm7 = vweird.f32 %v1163_v50  ;;  %v527_v23 = vmul.f32 %v519_v52, %v519_v52 }
 0x174   : > { %v875_v10 = vpop.eup %874  ;;  %vm1171_vm10 = vmand %vm563_vm2, %vm579_vm6  ;;  %vm570_vm11 = vweird.f32 %v533_v53  ;;  %v1176_v13 = vmul.f32 %v530_v54, %v1121_v61  ;;  %v524_v58 = vsub.f32 1.0, %v873_v55  ;;  %vm569_vm6 = vcmp.lt.s32.totalorder %v561_v57, 300 }
 0x175   : > { %v595_v59 = vsel %vm1171_vm10, %v534_v22, 0.0  ;;  %v775_v60 = vsel %vm1171_vm10, 1.0, %v921_v18  ;;  %vm581_vm12 = vmxor %vm573_vm7, %vm920_vm5  ;;  %v535_v63 = vmul.f32 %v527_v23, %v1125_v62  ;;  %v521_v0 = vsub.f32 1.0, %v875_v10 }
 0x176   : > { %vm1187_vm13 = vmand %vm565_vm3, %vm581_vm12  ;;  %vm575_vm14 = vweird.f32 %v1176_v13  ;;  %v532_v4 = vmul.f32 %v524_v58, %v524_v58  ;;  %v604_v3 = vsel %vm602_vm1, %v595_v59, 0.0  ;;  %v641_v11 = vsel %vm602_vm1, %v775_v60, 0.0 }
 0x177   : > { %v597_v15 = vsel %vm1187_vm13, %v1163_v50, 0.0  ;;  %vm578_vm0 = vmxor %vm570_vm11, %vm920_vm5  ;;  %v529_v62 = vmul.f32 %v521_v0, %v521_v0  ;;  %vm572_vm3 = vweird.f32 %v535_v63  ;;  %v777_v9 = vsel %vm1187_vm13, 1.0, %v921_v18 }
 0x178   : > { %v877_v2 = vpop.eup %876  ;;  %vm586_vm2 = vmand %vm562_vm8, %vm578_vm0  ;;  %v540_v6 = vmul.f32 %v532_v4, %v1136_v1  ;;  %v608_v38 = vsel %vm602_vm1, %v597_v15, 0.0  ;;  %v645_v39 = vsel %vm602_vm1, %v777_v9, 0.0  ;;  %v665_v15 = vld [vmem:[%s987_s27] sm:$0x1] }
 0x179   : > { %v523_v30 = vsub.f32 1.0, %v877_v2  ;;  %v594_v47 = vsel %vm586_vm2, %v533_v53, 0.0  ;;  %v774_v24 = vsel %vm586_vm2, 1.0, %v921_v18  ;;  %vm583_vm4 = vmxor %vm575_vm14, %vm920_vm5  ;;  %v537_v8 = vmul.f32 %v529_v62, %v1140_v21 }
 0x17a   : > { %v603_v5 = vsel %vm602_vm1, %v594_v47, 0.0  ;;  %v640_v25 = vsel %vm602_vm1, %v774_v24, 0.0  ;;  %vm1211_vm7 = vmand %vm567_vm9, %vm583_vm4  ;;  %vm577_vm8 = vweird.f32 %v540_v6  ;;  %v560_v21 = vadd.s32 %v1147_v26, %v551_v20 }
 0x17b   : > { %v531_v1 = vmul.f32 %v523_v30, %v523_v30  ;;  %v605_v17 = vadd.f32 %v604_v3, %v603_v5  ;;  %v642_v7 = vadd.f32 %v641_v11, %v640_v25  ;;  %v599_v27 = vsel %vm1211_vm7, %v1176_v13, 0.0  ;;  %vm580_vm10 = vmxor %vm572_vm3, %vm920_vm5  ;;  %v661_v3 = vld [vmem:[%s982_s24] sm:$0x1] }
 0x17c   : > { %vm588_vm11 = vmand %vm564_vm15, %vm580_vm10  ;;  %vm574_vm12 = vweird.f32 %v537_v8  ;;  %vm566_vm14 = vcmp.lt.s32.totalorder %v558_v35, 300  ;;  %vm568_vm2 = vcmp.lt.s32.totalorder %v560_v21, 300  ;;  %v779_v40 = vsel %vm1211_vm7, 1.0, %v921_v18 }
 0x17d   : > { %v539_v16 = vmul.f32 %v531_v1, %v1149_v14  ;;  %v596_v28 = vsel %vm588_vm11, %v535_v63, 0.0  ;;  %v776_v31 = vsel %vm588_vm11, 1.0, %v921_v18  ;;  %vm585_vm9 = vmxor %vm577_vm8, %vm920_vm5  ;;  %v612_v49 = vsel %vm602_vm1, %v599_v27, 0.0 }
 0x17e   : > { %v606_v32 = vsel %vm602_vm1, %v596_v28, 0.0  ;;  %v643_v33 = vsel %vm602_vm1, %v776_v31, 0.0  ;;  %vm1231_vm0 = vmand %vm569_vm6, %vm585_vm9  ;;  %v649_v50 = vsel %vm602_vm1, %v779_v40, 0.0 }
 0x17f   : > { %vm576_vm15 = vweird.f32 %v539_v16  ;;  %v607_v14 = vadd.f32 %v606_v32, %v605_v17  ;;  %v644_v34 = vadd.f32 %v643_v33, %v642_v7  ;;  %v601_v36 = vsel %vm1231_vm0, %v540_v6, 0.0  ;;  %vm582_vm13 = vmxor %vm574_vm12, %vm920_vm5 }
 0x180   : > { %vm590_vm3 = vmand %vm566_vm14, %vm582_vm13  ;;  %v781_v53 = vsel %vm1231_vm0, 1.0, %v921_v18  ;;  %v616_v10 = vsel %vm602_vm1, %v601_v36, 0.0 }
 0x181   : > { %v609_v41 = vadd.f32 %v608_v38, %v607_v14  ;;  %v646_v42 = vadd.f32 %v645_v39, %v644_v34  ;;  %v598_v43 = vsel %vm590_vm3, %v537_v8, 0.0  ;;  %v778_v44 = vsel %vm590_vm3, 1.0, %v921_v18  ;;  %vm584_vm4 = vmxor %vm576_vm15, %vm920_vm5 }
 0x182   : > { %v610_v45 = vsel %vm602_vm1, %v598_v43, 0.0  ;;  %v647_v46 = vsel %vm602_vm1, %v778_v44, 0.0  ;;  %vm592_vm6 = vmand %vm568_vm2, %vm584_vm4  ;;  %v653_v56 = vsel %vm602_vm1, %v781_v53, 0.0  ;;  %vm663_vm5 = vcmask 0  }
 0x183   : > { %v611_v19 = vadd.f32 %v610_v45, %v609_v41  ;;  %v648_v22 = vadd.f32 %v647_v46, %v646_v42  ;;  %v600_v12 = vsel %vm592_vm6, %v539_v16, 0.0  ;;  %v780_v48 = vsel %vm592_vm6, 1.0, %v921_v18 }
 0x184   : > { %v614_v51 = vsel %vm602_vm1, %v600_v12, 0.0  ;;  %v651_v52 = vsel %vm602_vm1, %v780_v48, 0.0 }
 0x185   : > { %v613_v54 = vadd.f32 %v612_v49, %v611_v19  ;;  %v650_v29 = vadd.f32 %v649_v50, %v648_v22 }
 0x187   : > { %v615_v55 = vadd.f32 %v614_v51, %v613_v54  ;;  %v652_v23 = vadd.f32 %v651_v52, %v650_v29 }
 0x189   : > { %v617_v13 = vadd.f32 %v616_v10, %v615_v55  ;;  %v654_v57 = vadd.f32 %v653_v56, %v652_v23 }
 0x18b   : > { %v618_v58 = vrot.slane %v617_v13, 4  ;;  %v655_v59 = vrot.slane %v654_v57, 4 }
 0x18d   : > { %v619_v60 = vadd.f32 %v618_v58, %v617_v13  ;;  %v656_v63 = vadd.f32 %v655_v59, %v654_v57 }
 0x18f   : > { %v620_v0 = vrot.slane %v619_v60, 2  ;;  %v657_v18 = vrot.slane %v656_v63, 2 }
 0x191   : > { %v621_v61 = vadd.f32 %v620_v0, %v619_v60  ;;  %v658_v4 = vadd.f32 %v657_v18, %v656_v63 }
 0x193   : > { %v622_v35 = vrot.slane %v621_v61, 1  ;;  %v659_v2 = vrot.slane %v658_v4, 1 }
 0x195   : > { %v623_v62 = vadd.f32 %v622_v35, %v621_v61  ;;  %v660_v20 = vadd.f32 %v659_v2, %v658_v4 }
 0x197   : > { %v662_v11 = vadd.f32 %v661_v3, %v623_v62  ;;  %v666_v6 = vadd.f32 %v665_v15, %v660_v20 }
 0x199   : > { %664 = vst.msk [vmem:[%s982_s24] sm:$0x1] %vm663_vm5, %v662_v11  ;;  %667 = vst.msk [vmem:[%s987_s27] sm:$0x1] %vm663_vm5, %v666_v6 }
 0x19a PF: > { %s14_s16 = sadd.s32 1, %s916_s16   ;;  %s1288_s12 = smov %s908_s14 }
 0x19b   : > { %p11_p9 = scmp.ge.s32.totalorder %s14_s16, 8   ;;  %s1289_s13 = smov %s912_s15 }
 0x19c   : > { %s1290_s14 = smov %s1293_s17  ;;  %s1291_s15 = smov %s1297_s18 }
 0x19d   :  { %13 = sbr.rel (!%p11_p9) target bundleno = 3 (0x3), region = 77 }

</bundles_post_ra>
